<compile_context>
chip_gen: v6e
topology: v6e:2x2x1
jax: 0.10.0
libtpu: 0.0.40
codegen_flags: <defaults>
</compile_context>

<pallas_src>
import math
import jax
import jax.numpy as jnp
from jax.experimental import pallas as pl
from jax.experimental.pallas import tpu as pltpu

# Small, module-consistent shapes
BATCH = 2
SEQ = 8
D_MODEL = 32
NHEAD = 4
D_K = D_MODEL // NHEAD
DIM_FF = 64
LN_EPS = 1e-5  # nn.LayerNorm default

# Lane offsets inside the fused weight slab (D_MODEL, 192)
_QKV_LO, _QKV_HI = 0, 3 * D_MODEL                 # [0:96)   wq/sqrt(dk) | wk | wv
_WO_LO, _WO_HI = _QKV_HI, _QKV_HI + D_MODEL       # [96:128) wo
_W1_LO, _W1_HI = _WO_HI, _WO_HI + DIM_FF          # [128:192) w1

# Row indices inside the bias/LN-param slab (8, 128)
_R_BQKV, _R_BO, _R_G1, _R_BE1, _R_B1, _R_B2, _R_G2, _R_BE2 = range(8)


def encoder_layer_kernel(x_ref, w_ref, w2_ref, p_ref, o_ref):
    x = x_ref[...]                                  # (B*S, D)
    W = p_slab = None  # (placeholders to keep linters quiet)
    W = w_ref[...]                                  # (D, 192)  fused [wqkv | wo | w1]
    P = p_ref[...]                                  # (8, 128)  fused biases / LN params

    bqkv = P[_R_BQKV:_R_BQKV + 1, 0:3 * D_MODEL]    # (1, 96)
    bo   = P[_R_BO:_R_BO + 1, 0:D_MODEL]            # (1, 32)
    g1   = P[_R_G1:_R_G1 + 1, 0:D_MODEL]
    be1  = P[_R_BE1:_R_BE1 + 1, 0:D_MODEL]
    b1   = P[_R_B1:_R_B1 + 1, 0:DIM_FF]             # (1, 64)
    b2   = P[_R_B2:_R_B2 + 1, 0:D_MODEL]
    g2   = P[_R_G2:_R_G2 + 1, 0:D_MODEL]
    be2  = P[_R_BE2:_R_BE2 + 1, 0:D_MODEL]

    # ---------------- fused QKV projection ----------------
    # 1/sqrt(d_k) is folded into the q part of the weight/bias at load time.
    qkv = jnp.dot(x, W[:, _QKV_LO:_QKV_HI],
                  preferred_element_type=jnp.float32) + bqkv        # (B*S, 96)

    q_all = qkv[:, 0:D_MODEL].reshape(BATCH, SEQ, D_MODEL)
    k_all = qkv[:, D_MODEL:2 * D_MODEL].reshape(BATCH, SEQ, D_MODEL)
    v_all = qkv[:, 2 * D_MODEL:3 * D_MODEL].reshape(BATCH, SEQ, D_MODEL)

    # ---------------- multi-head attention ----------------
    # Static head loop; each head is batched over B with 3-D einsums (contract last
    # dims -> no K transpose).  The output projection is applied per head and
    # accumulated, removing the lane-axis concatenate of head outputs.
    attn = jnp.zeros((BATCH * SEQ, D_MODEL), jnp.float32)
    for h in range(NHEAD):
        lo, hi = h * D_K, (h + 1) * D_K
        q_h = q_all[:, :, lo:hi]                                     # (B, S, d_k)
        k_h = k_all[:, :, lo:hi]
        v_h = v_all[:, :, lo:hi]

        scores = jnp.einsum("bqd,bkd->bqk", q_h, k_h,
                            preferred_element_type=jnp.float32)      # (B, S, S)
        # TODO(synk): src_mask branch not wired; callers use src_mask=None (PyTorch
        #             default).  If wired, masked positions must get a large NEGATIVE
        #             fill on the pre-softmax scores.
        m = jnp.max(scores, axis=-1, keepdims=True)
        e = jnp.exp(scores - m)
        # exact reciprocal (approx=False) keeps the 1e-4 correctness tolerance
        p = e * pl.reciprocal(jnp.sum(e, axis=-1, keepdims=True))    # attn dropout = id
        o_h = jnp.einsum("bqk,bkd->bqd", p, v_h,
                         preferred_element_type=jnp.float32)         # (B, S, d_k)

        wo_h = W[lo:hi, _WO_LO:_WO_HI]                               # (d_k, D)
        attn = attn + jnp.dot(o_h.reshape(BATCH * SEQ, D_K), wo_h,
                              preferred_element_type=jnp.float32)

    # -------- residual + LayerNorm1 (dropout1 = identity) --------
    s1 = x + attn + bo
    mu1 = jnp.mean(s1, axis=-1, keepdims=True)
    var1 = jnp.mean((s1 - mu1) ** 2, axis=-1, keepdims=True)
    s1 = (s1 - mu1) * jax.lax.rsqrt(var1 + LN_EPS) * g1 + be1

    # ---------------- FeedForward ----------------
    h1 = jnp.dot(s1, W[:, _W1_LO:_W1_HI],
                 preferred_element_type=jnp.float32) + b1
    h1 = jnp.maximum(h1, 0.0)                                        # ReLU (dropout = id)
    ff = jnp.dot(h1, w2_ref[...], preferred_element_type=jnp.float32) + b2

    # -------- residual + LayerNorm2 (dropout2 = identity) --------
    s2 = s1 + ff
    mu2 = jnp.mean(s2, axis=-1, keepdims=True)
    var2 = jnp.mean((s2 - mu2) ** 2, axis=-1, keepdims=True)
    out = (s2 - mu2) * jax.lax.rsqrt(var2 + LN_EPS) * g2 + be2

    o_ref[...] = out.astype(o_ref.dtype)


def fuse_params(params):
    """One-time (load-time) parameter fusion into 3 VMEM slabs.

    Returns [w_slab (D, 192), w2 (FF, D), p_slab (8, 128)].
    1/sqrt(d_k) is folded into the q weight/bias.
    """
    (wq, bq, wk, bk, wv, bv, wo, bo, g1, be1, w1, b1, w2, b2, g2, be2) = params
    scale = 1.0 / math.sqrt(D_K)
    w_slab = jnp.concatenate([wq * scale, wk, wv, wo, w1], axis=1)   # (D, 192)

    def row(v):
        v = v.reshape(1, -1)
        return jnp.pad(v, ((0, 0), (0, 128 - v.shape[1])))

    bqkv = jnp.concatenate([bq * scale, bk, bv], axis=1)             # (1, 96)
    p_slab = jnp.concatenate(
        [row(bqkv), row(bo), row(g1), row(be1),
         row(b1), row(b2), row(g2), row(be2)], axis=0)               # (8, 128)
    return [w_slab, w2, p_slab]


def encoder_layer(x, fused_params):
    """x: (B, S, D) float32; fused_params: output of fuse_params()."""
    B, S, D = x.shape
    assert (B, S, D) == (BATCH, SEQ, D_MODEL)
    x2 = x.reshape(B * S, D)   # attention never mixes batch rows (handled in-kernel)
    args = [x2] + list(fused_params)

    flops = (2 * B * S * D * 3 * D                       # fused QKV projection
             + 2 * 2 * B * NHEAD * S * S * D_K           # scores + p@v
             + 2 * B * S * D * D                         # output projection
             + 2 * 2 * B * S * D * DIM_FF)               # ff1 + ff2
    cost = pl.CostEstimate(
        flops=flops,
        transcendentals=B * NHEAD * S * S + 2 * B * S,   # exp + rsqrt
        bytes_accessed=4 * (2 * B * S * D + D * 192 + DIM_FF * D + 8 * 128),
    )

    out = pl.pallas_call(
        encoder_layer_kernel,
        out_shape=jax.ShapeDtypeStruct((B * S, D), jnp.float32),
        in_specs=[pl.BlockSpec(memory_space=pltpu.MemorySpace.VMEM) for _ in args],
        out_specs=pl.BlockSpec(memory_space=pltpu.MemorySpace.VMEM),
        cost_estimate=cost,
    )(*args)
    return out.reshape(B, S, D)


def init_params(key):
    """Deterministic synthetic parameters. Linear weights stored as (in, out) so y = x @ W + b."""
    ks = jax.random.split(key, 12)

    def w(k, shape, fan_in):
        return jax.random.normal(k, shape, jnp.float32) / math.sqrt(fan_in)

    wq = w(ks[0], (D_MODEL, D_MODEL), D_MODEL); bq = jnp.zeros((1, D_MODEL), jnp.float32)
    wk = w(ks[1], (D_MODEL, D_MODEL), D_MODEL); bk = 0.01 * jnp.ones((1, D_MODEL), jnp.float32)
    wv = w(ks[2], (D_MODEL, D_MODEL), D_MODEL); bv = jnp.zeros((1, D_MODEL), jnp.float32)
    wo = w(ks[3], (D_MODEL, D_MODEL), D_MODEL); bo = 0.02 * jnp.ones((1, D_MODEL), jnp.float32)
    g1 = jnp.ones((1, D_MODEL), jnp.float32);  be1 = jnp.zeros((1, D_MODEL), jnp.float32)
    w1 = w(ks[4], (D_MODEL, DIM_FF), D_MODEL); b1 = 0.03 * jnp.ones((1, DIM_FF), jnp.float32)
    w2 = w(ks[5], (DIM_FF, D_MODEL), DIM_FF);  b2 = jnp.zeros((1, D_MODEL), jnp.float32)
    g2 = jnp.ones((1, D_MODEL), jnp.float32);  be2 = jnp.zeros((1, D_MODEL), jnp.float32)
    return [wq, bq, wk, bk, wv, bv, wo, bo, g1, be1, w1, b1, w2, b2, g2, be2]


def encoder_layer_ref(x, params):
    """Pure-JAX reference mirroring the PyTorch forward (eval mode)."""
    (wq, bq, wk, bk, wv, bv, wo, bo, g1, be1, w1, b1, w2, b2, g2, be2) = params
    B, S, D = x.shape

    def lin(a, W, b):
        return a @ W + b

    q = lin(x, wq, bq).reshape(B, S, NHEAD, D_K).transpose(0, 2, 1, 3)
    k = lin(x, wk, bk).reshape(B, S, NHEAD, D_K).transpose(0, 2, 1, 3)
    v = lin(x, wv, bv).reshape(B, S, NHEAD, D_K).transpose(0, 2, 1, 3)
    scores = jnp.einsum("bhqd,bhkd->bhqk", q, k) / math.sqrt(D_K)
    p = jax.nn.softmax(scores, axis=-1)
    a = jnp.einsum("bhqk,bhkd->bhqd", p, v).transpose(0, 2, 1, 3).reshape(B, S, D)
    src2 = lin(a, wo, bo)
    src = x + src2
    mu = src.mean(-1, keepdims=True); var = ((src - mu) ** 2).mean(-1, keepdims=True)
    src = (src - mu) / jnp.sqrt(var + LN_EPS) * g1 + be1
    ff = lin(jnp.maximum(lin(src, w1, b1), 0.0), w2, b2)
    src = src + ff
    mu = src.mean(-1, keepdims=True); var = ((src - mu) ** 2).mean(-1, keepdims=True)
    return (src - mu) / jnp.sqrt(var + LN_EPS) * g2 + be2


if __name__ == "__main__":
    key = jax.random.PRNGKey(0)
    kx, kp = jax.random.split(key)
    x = jax.random.normal(kx, (BATCH, SEQ, D_MODEL), jnp.float32)
    params = init_params(kp)
    fused = fuse_params(params)   # load-time fusion (not in the per-call path)

    out = encoder_layer(x, fused)
    out = jax.block_until_ready(out)

    ref = encoder_layer_ref(x, params)
    if not jnp.allclose(out, ref, rtol=1e-4, atol=1e-4):
        raise AssertionError(
            f"Pallas output mismatch: max abs diff = {jnp.max(jnp.abs(out - ref))}"
        )
    print("KERNEL_OK")
</pallas_src>

<mosaic_0001>
module attributes {stable_mosaic.version = 11 : i64} {
  func.func @encoder_layer_kernel(%arg0: memref<16x32xf32, #tpu.memory_space<vmem>>, %arg1: memref<32x192xf32, #tpu.memory_space<vmem>>, %arg2: memref<64x32xf32, #tpu.memory_space<vmem>>, %arg3: memref<8x128xf32, #tpu.memory_space<vmem>>, %arg4: memref<16x32xf32, #tpu.memory_space<vmem>>) attributes {dimension_semantics = [], scalar_prefetch = 0 : i64, scratch_operands = 0 : i64, tpu.core_type = #tpu.core_type<tc>} {
    %c0 = arith.constant 0 : index
    %c0_0 = arith.constant 0 : index
    %0 = vector.load %arg0[%c0, %c0_0] : memref<16x32xf32, #tpu.memory_space<vmem>>, vector<16x32xf32>
    %c0_1 = arith.constant 0 : index
    %c0_2 = arith.constant 0 : index
    %1 = vector.load %arg1[%c0_1, %c0_2] : memref<32x192xf32, #tpu.memory_space<vmem>>, vector<32x192xf32>
    %c0_3 = arith.constant 0 : index
    %c0_4 = arith.constant 0 : index
    %2 = vector.load %arg3[%c0_3, %c0_4] : memref<8x128xf32, #tpu.memory_space<vmem>>, vector<8x128xf32>
    %3 = vector.extract_strided_slice %2 {offsets = [0, 0], sizes = [1, 96], strides = [1, 1]} : vector<8x128xf32> to vector<1x96xf32>
    %4 = vector.extract_strided_slice %2 {offsets = [1, 0], sizes = [1, 32], strides = [1, 1]} : vector<8x128xf32> to vector<1x32xf32>
    %5 = vector.extract_strided_slice %2 {offsets = [2, 0], sizes = [1, 32], strides = [1, 1]} : vector<8x128xf32> to vector<1x32xf32>
    %6 = vector.extract_strided_slice %2 {offsets = [3, 0], sizes = [1, 32], strides = [1, 1]} : vector<8x128xf32> to vector<1x32xf32>
    %7 = vector.extract_strided_slice %2 {offsets = [4, 0], sizes = [1, 64], strides = [1, 1]} : vector<8x128xf32> to vector<1x64xf32>
    %8 = vector.extract_strided_slice %2 {offsets = [5, 0], sizes = [1, 32], strides = [1, 1]} : vector<8x128xf32> to vector<1x32xf32>
    %9 = vector.extract_strided_slice %2 {offsets = [6, 0], sizes = [1, 32], strides = [1, 1]} : vector<8x128xf32> to vector<1x32xf32>
    %10 = vector.extract_strided_slice %2 {offsets = [7, 0], sizes = [1, 32], strides = [1, 1]} : vector<8x128xf32> to vector<1x32xf32>
    %11 = vector.extract_strided_slice %1 {offsets = [0, 0], sizes = [32, 96], strides = [1, 1]} : vector<32x192xf32> to vector<32x96xf32>
    %cst = arith.constant dense<0.000000e+00> : vector<16x96xf32>
    %12 = tpu.matmul %0, %11, %cst {dimension_numbers = #tpu.dot_dimension_numbers<[1], [0], [0], [1], [0, 0, 1, 1], [], []>} : vector<16x32xf32>, vector<32x96xf32>, vector<16x96xf32> -> vector<16x96xf32>
    %13 = vector.broadcast %3 : vector<1x96xf32> to vector<16x96xf32>
    %14 = arith.addf %12, %13 : vector<16x96xf32>
    %15 = vector.extract_strided_slice %14 {offsets = [0, 0], sizes = [16, 32], strides = [1, 1]} : vector<16x96xf32> to vector<16x32xf32>
    %16 = vector.shape_cast %15 : vector<16x32xf32> to vector<2x8x32xf32>
    %17 = vector.extract_strided_slice %14 {offsets = [0, 32], sizes = [16, 32], strides = [1, 1]} : vector<16x96xf32> to vector<16x32xf32>
    %18 = vector.shape_cast %17 : vector<16x32xf32> to vector<2x8x32xf32>
    %19 = vector.extract_strided_slice %14 {offsets = [0, 64], sizes = [16, 32], strides = [1, 1]} : vector<16x96xf32> to vector<16x32xf32>
    %20 = vector.shape_cast %19 : vector<16x32xf32> to vector<2x8x32xf32>
    %cst_5 = arith.constant 0.000000e+00 : f32
    %21 = vector.broadcast %cst_5 : f32 to vector<16x32xf32>
    %22 = vector.extract_strided_slice %16 {offsets = [0, 0, 0], sizes = [2, 8, 8], strides = [1, 1, 1]} : vector<2x8x32xf32> to vector<2x8x8xf32>
    %23 = vector.extract_strided_slice %18 {offsets = [0, 0, 0], sizes = [2, 8, 8], strides = [1, 1, 1]} : vector<2x8x32xf32> to vector<2x8x8xf32>
    %24 = vector.extract_strided_slice %20 {offsets = [0, 0, 0], sizes = [2, 8, 8], strides = [1, 1, 1]} : vector<2x8x32xf32> to vector<2x8x8xf32>
    "tpu.trace_start"() <{level = 10 : i32, message = "bqd,bkd->bqk"}> : () -> ()
    %cst_6 = arith.constant dense<0.000000e+00> : vector<2x8x8xf32>
    %25 = tpu.matmul %22, %23, %cst_6 {dimension_numbers = #tpu.dot_dimension_numbers<[2], [2], [1], [1], [0, 0, 0, 1, 1, 1], [0], [0]>} : vector<2x8x8xf32>, vector<2x8x8xf32>, vector<2x8x8xf32> -> vector<2x8x8xf32>
    "tpu.trace_stop"() : () -> ()
    %cst_7 = arith.constant dense<0xFF800000> : vector<2x8xf32>
    %26 = vector.multi_reduction <maximumf>, %25, %cst_7 [2] : vector<2x8x8xf32> to vector<2x8xf32>
    %27 = vector.shape_cast %26 : vector<2x8xf32> to vector<2x8x1xf32>
    %28 = vector.broadcast %27 : vector<2x8x1xf32> to vector<2x8x8xf32>
    %29 = arith.subf %25, %28 : vector<2x8x8xf32>
    %30 = math.exp %29 : vector<2x8x8xf32>
    %cst_8 = arith.constant dense<0.000000e+00> : vector<2x8xf32>
    %31 = vector.multi_reduction <add>, %30, %cst_8 [2] : vector<2x8x8xf32> to vector<2x8xf32>
    %32 = vector.shape_cast %31 : vector<2x8xf32> to vector<2x8x1xf32>
    %33 = tpu.reciprocal %32 : vector<2x8x1xf32> -> vector<2x8x1xf32>
    %34 = vector.broadcast %33 : vector<2x8x1xf32> to vector<2x8x8xf32>
    %35 = arith.mulf %30, %34 : vector<2x8x8xf32>
    "tpu.trace_start"() <{level = 10 : i32, message = "bqk,bkd->bqd"}> : () -> ()
    %cst_9 = arith.constant dense<0.000000e+00> : vector<2x8x8xf32>
    %36 = tpu.matmul %35, %24, %cst_9 {dimension_numbers = #tpu.dot_dimension_numbers<[2], [1], [1], [2], [0, 0, 0, 1, 1, 2], [0], [0]>} : vector<2x8x8xf32>, vector<2x8x8xf32>, vector<2x8x8xf32> -> vector<2x8x8xf32>
    "tpu.trace_stop"() : () -> ()
    %37 = vector.extract_strided_slice %1 {offsets = [0, 96], sizes = [8, 32], strides = [1, 1]} : vector<32x192xf32> to vector<8x32xf32>
    %38 = vector.shape_cast %36 : vector<2x8x8xf32> to vector<16x8xf32>
    %cst_10 = arith.constant dense<0.000000e+00> : vector<16x32xf32>
    %39 = tpu.matmul %38, %37, %cst_10 {dimension_numbers = #tpu.dot_dimension_numbers<[1], [0], [0], [1], [0, 0, 1, 1], [], []>} : vector<16x8xf32>, vector<8x32xf32>, vector<16x32xf32> -> vector<16x32xf32>
    %40 = arith.addf %21, %39 : vector<16x32xf32>
    %41 = vector.extract_strided_slice %16 {offsets = [0, 0, 8], sizes = [2, 8, 8], strides = [1, 1, 1]} : vector<2x8x32xf32> to vector<2x8x8xf32>
    %42 = vector.extract_strided_slice %18 {offsets = [0, 0, 8], sizes = [2, 8, 8], strides = [1, 1, 1]} : vector<2x8x32xf32> to vector<2x8x8xf32>
    %43 = vector.extract_strided_slice %20 {offsets = [0, 0, 8], sizes = [2, 8, 8], strides = [1, 1, 1]} : vector<2x8x32xf32> to vector<2x8x8xf32>
    "tpu.trace_start"() <{level = 10 : i32, message = "bqd,bkd->bqk"}> : () -> ()
    %cst_11 = arith.constant dense<0.000000e+00> : vector<2x8x8xf32>
    %44 = tpu.matmul %41, %42, %cst_11 {dimension_numbers = #tpu.dot_dimension_numbers<[2], [2], [1], [1], [0, 0, 0, 1, 1, 1], [0], [0]>} : vector<2x8x8xf32>, vector<2x8x8xf32>, vector<2x8x8xf32> -> vector<2x8x8xf32>
    "tpu.trace_stop"() : () -> ()
    %cst_12 = arith.constant dense<0xFF800000> : vector<2x8xf32>
    %45 = vector.multi_reduction <maximumf>, %44, %cst_12 [2] : vector<2x8x8xf32> to vector<2x8xf32>
    %46 = vector.shape_cast %45 : vector<2x8xf32> to vector<2x8x1xf32>
    %47 = vector.broadcast %46 : vector<2x8x1xf32> to vector<2x8x8xf32>
    %48 = arith.subf %44, %47 : vector<2x8x8xf32>
    %49 = math.exp %48 : vector<2x8x8xf32>
    %cst_13 = arith.constant dense<0.000000e+00> : vector<2x8xf32>
    %50 = vector.multi_reduction <add>, %49, %cst_13 [2] : vector<2x8x8xf32> to vector<2x8xf32>
    %51 = vector.shape_cast %50 : vector<2x8xf32> to vector<2x8x1xf32>
    %52 = tpu.reciprocal %51 : vector<2x8x1xf32> -> vector<2x8x1xf32>
    %53 = vector.broadcast %52 : vector<2x8x1xf32> to vector<2x8x8xf32>
    %54 = arith.mulf %49, %53 : vector<2x8x8xf32>
    "tpu.trace_start"() <{level = 10 : i32, message = "bqk,bkd->bqd"}> : () -> ()
    %cst_14 = arith.constant dense<0.000000e+00> : vector<2x8x8xf32>
    %55 = tpu.matmul %54, %43, %cst_14 {dimension_numbers = #tpu.dot_dimension_numbers<[2], [1], [1], [2], [0, 0, 0, 1, 1, 2], [0], [0]>} : vector<2x8x8xf32>, vector<2x8x8xf32>, vector<2x8x8xf32> -> vector<2x8x8xf32>
    "tpu.trace_stop"() : () -> ()
    %56 = vector.extract_strided_slice %1 {offsets = [8, 96], sizes = [8, 32], strides = [1, 1]} : vector<32x192xf32> to vector<8x32xf32>
    %57 = vector.shape_cast %55 : vector<2x8x8xf32> to vector<16x8xf32>
    %cst_15 = arith.constant dense<0.000000e+00> : vector<16x32xf32>
    %58 = tpu.matmul %57, %56, %cst_15 {dimension_numbers = #tpu.dot_dimension_numbers<[1], [0], [0], [1], [0, 0, 1, 1], [], []>} : vector<16x8xf32>, vector<8x32xf32>, vector<16x32xf32> -> vector<16x32xf32>
    %59 = arith.addf %40, %58 : vector<16x32xf32>
    %60 = vector.extract_strided_slice %16 {offsets = [0, 0, 16], sizes = [2, 8, 8], strides = [1, 1, 1]} : vector<2x8x32xf32> to vector<2x8x8xf32>
    %61 = vector.extract_strided_slice %18 {offsets = [0, 0, 16], sizes = [2, 8, 8], strides = [1, 1, 1]} : vector<2x8x32xf32> to vector<2x8x8xf32>
    %62 = vector.extract_strided_slice %20 {offsets = [0, 0, 16], sizes = [2, 8, 8], strides = [1, 1, 1]} : vector<2x8x32xf32> to vector<2x8x8xf32>
    "tpu.trace_start"() <{level = 10 : i32, message = "bqd,bkd->bqk"}> : () -> ()
    %cst_16 = arith.constant dense<0.000000e+00> : vector<2x8x8xf32>
    %63 = tpu.matmul %60, %61, %cst_16 {dimension_numbers = #tpu.dot_dimension_numbers<[2], [2], [1], [1], [0, 0, 0, 1, 1, 1], [0], [0]>} : vector<2x8x8xf32>, vector<2x8x8xf32>, vector<2x8x8xf32> -> vector<2x8x8xf32>
    "tpu.trace_stop"() : () -> ()
    %cst_17 = arith.constant dense<0xFF800000> : vector<2x8xf32>
    %64 = vector.multi_reduction <maximumf>, %63, %cst_17 [2] : vector<2x8x8xf32> to vector<2x8xf32>
    %65 = vector.shape_cast %64 : vector<2x8xf32> to vector<2x8x1xf32>
    %66 = vector.broadcast %65 : vector<2x8x1xf32> to vector<2x8x8xf32>
    %67 = arith.subf %63, %66 : vector<2x8x8xf32>
    %68 = math.exp %67 : vector<2x8x8xf32>
    %cst_18 = arith.constant dense<0.000000e+00> : vector<2x8xf32>
    %69 = vector.multi_reduction <add>, %68, %cst_18 [2] : vector<2x8x8xf32> to vector<2x8xf32>
    %70 = vector.shape_cast %69 : vector<2x8xf32> to vector<2x8x1xf32>
    %71 = tpu.reciprocal %70 : vector<2x8x1xf32> -> vector<2x8x1xf32>
    %72 = vector.broadcast %71 : vector<2x8x1xf32> to vector<2x8x8xf32>
    %73 = arith.mulf %68, %72 : vector<2x8x8xf32>
    "tpu.trace_start"() <{level = 10 : i32, message = "bqk,bkd->bqd"}> : () -> ()
    %cst_19 = arith.constant dense<0.000000e+00> : vector<2x8x8xf32>
    %74 = tpu.matmul %73, %62, %cst_19 {dimension_numbers = #tpu.dot_dimension_numbers<[2], [1], [1], [2], [0, 0, 0, 1, 1, 2], [0], [0]>} : vector<2x8x8xf32>, vector<2x8x8xf32>, vector<2x8x8xf32> -> vector<2x8x8xf32>
    "tpu.trace_stop"() : () -> ()
    %75 = vector.extract_strided_slice %1 {offsets = [16, 96], sizes = [8, 32], strides = [1, 1]} : vector<32x192xf32> to vector<8x32xf32>
    %76 = vector.shape_cast %74 : vector<2x8x8xf32> to vector<16x8xf32>
    %cst_20 = arith.constant dense<0.000000e+00> : vector<16x32xf32>
    %77 = tpu.matmul %76, %75, %cst_20 {dimension_numbers = #tpu.dot_dimension_numbers<[1], [0], [0], [1], [0, 0, 1, 1], [], []>} : vector<16x8xf32>, vector<8x32xf32>, vector<16x32xf32> -> vector<16x32xf32>
    %78 = arith.addf %59, %77 : vector<16x32xf32>
    %79 = vector.extract_strided_slice %16 {offsets = [0, 0, 24], sizes = [2, 8, 8], strides = [1, 1, 1]} : vector<2x8x32xf32> to vector<2x8x8xf32>
    %80 = vector.extract_strided_slice %18 {offsets = [0, 0, 24], sizes = [2, 8, 8], strides = [1, 1, 1]} : vector<2x8x32xf32> to vector<2x8x8xf32>
    %81 = vector.extract_strided_slice %20 {offsets = [0, 0, 24], sizes = [2, 8, 8], strides = [1, 1, 1]} : vector<2x8x32xf32> to vector<2x8x8xf32>
    "tpu.trace_start"() <{level = 10 : i32, message = "bqd,bkd->bqk"}> : () -> ()
    %cst_21 = arith.constant dense<0.000000e+00> : vector<2x8x8xf32>
    %82 = tpu.matmul %79, %80, %cst_21 {dimension_numbers = #tpu.dot_dimension_numbers<[2], [2], [1], [1], [0, 0, 0, 1, 1, 1], [0], [0]>} : vector<2x8x8xf32>, vector<2x8x8xf32>, vector<2x8x8xf32> -> vector<2x8x8xf32>
    "tpu.trace_stop"() : () -> ()
    %cst_22 = arith.constant dense<0xFF800000> : vector<2x8xf32>
    %83 = vector.multi_reduction <maximumf>, %82, %cst_22 [2] : vector<2x8x8xf32> to vector<2x8xf32>
    %84 = vector.shape_cast %83 : vector<2x8xf32> to vector<2x8x1xf32>
    %85 = vector.broadcast %84 : vector<2x8x1xf32> to vector<2x8x8xf32>
    %86 = arith.subf %82, %85 : vector<2x8x8xf32>
    %87 = math.exp %86 : vector<2x8x8xf32>
    %cst_23 = arith.constant dense<0.000000e+00> : vector<2x8xf32>
    %88 = vector.multi_reduction <add>, %87, %cst_23 [2] : vector<2x8x8xf32> to vector<2x8xf32>
    %89 = vector.shape_cast %88 : vector<2x8xf32> to vector<2x8x1xf32>
    %90 = tpu.reciprocal %89 : vector<2x8x1xf32> -> vector<2x8x1xf32>
    %91 = vector.broadcast %90 : vector<2x8x1xf32> to vector<2x8x8xf32>
    %92 = arith.mulf %87, %91 : vector<2x8x8xf32>
    "tpu.trace_start"() <{level = 10 : i32, message = "bqk,bkd->bqd"}> : () -> ()
    %cst_24 = arith.constant dense<0.000000e+00> : vector<2x8x8xf32>
    %93 = tpu.matmul %92, %81, %cst_24 {dimension_numbers = #tpu.dot_dimension_numbers<[2], [1], [1], [2], [0, 0, 0, 1, 1, 2], [0], [0]>} : vector<2x8x8xf32>, vector<2x8x8xf32>, vector<2x8x8xf32> -> vector<2x8x8xf32>
    "tpu.trace_stop"() : () -> ()
    %94 = vector.extract_strided_slice %1 {offsets = [24, 96], sizes = [8, 32], strides = [1, 1]} : vector<32x192xf32> to vector<8x32xf32>
    %95 = vector.shape_cast %93 : vector<2x8x8xf32> to vector<16x8xf32>
    %cst_25 = arith.constant dense<0.000000e+00> : vector<16x32xf32>
    %96 = tpu.matmul %95, %94, %cst_25 {dimension_numbers = #tpu.dot_dimension_numbers<[1], [0], [0], [1], [0, 0, 1, 1], [], []>} : vector<16x8xf32>, vector<8x32xf32>, vector<16x32xf32> -> vector<16x32xf32>
    %97 = arith.addf %78, %96 : vector<16x32xf32>
    %98 = arith.addf %0, %97 : vector<16x32xf32>
    %99 = vector.broadcast %4 : vector<1x32xf32> to vector<16x32xf32>
    %100 = arith.addf %98, %99 : vector<16x32xf32>
    %cst_26 = arith.constant dense<0.000000e+00> : vector<16xf32>
    %101 = vector.multi_reduction <add>, %100, %cst_26 [1] : vector<16x32xf32> to vector<16xf32>
    %102 = vector.shape_cast %101 : vector<16xf32> to vector<16x1xf32>
    %cst_27 = arith.constant 3.200000e+01 : f32
    %103 = vector.broadcast %cst_27 : f32 to vector<16x1xf32>
    %104 = arith.divf %102, %103 : vector<16x1xf32>
    %105 = vector.broadcast %104 : vector<16x1xf32> to vector<16x32xf32>
    %106 = arith.subf %100, %105 : vector<16x32xf32>
    %107 = arith.mulf %106, %106 : vector<16x32xf32>
    %cst_28 = arith.constant dense<0.000000e+00> : vector<16xf32>
    %108 = vector.multi_reduction <add>, %107, %cst_28 [1] : vector<16x32xf32> to vector<16xf32>
    %109 = vector.shape_cast %108 : vector<16xf32> to vector<16x1xf32>
    %cst_29 = arith.constant 3.200000e+01 : f32
    %110 = vector.broadcast %cst_29 : f32 to vector<16x1xf32>
    %111 = arith.divf %109, %110 : vector<16x1xf32>
    %112 = vector.broadcast %104 : vector<16x1xf32> to vector<16x32xf32>
    %113 = arith.subf %100, %112 : vector<16x32xf32>
    %cst_30 = arith.constant 9.99999974E-6 : f32
    %114 = vector.broadcast %cst_30 : f32 to vector<16x1xf32>
    %115 = arith.addf %111, %114 : vector<16x1xf32>
    %116 = math.rsqrt %115 : vector<16x1xf32>
    %117 = vector.broadcast %116 : vector<16x1xf32> to vector<16x32xf32>
    %118 = arith.mulf %113, %117 : vector<16x32xf32>
    %119 = vector.broadcast %5 : vector<1x32xf32> to vector<16x32xf32>
    %120 = arith.mulf %118, %119 : vector<16x32xf32>
    %121 = vector.broadcast %6 : vector<1x32xf32> to vector<16x32xf32>
    %122 = arith.addf %120, %121 : vector<16x32xf32>
    %123 = vector.extract_strided_slice %1 {offsets = [0, 128], sizes = [32, 64], strides = [1, 1]} : vector<32x192xf32> to vector<32x64xf32>
    %cst_31 = arith.constant dense<0.000000e+00> : vector<16x64xf32>
    %124 = tpu.matmul %122, %123, %cst_31 {dimension_numbers = #tpu.dot_dimension_numbers<[1], [0], [0], [1], [0, 0, 1, 1], [], []>} : vector<16x32xf32>, vector<32x64xf32>, vector<16x64xf32> -> vector<16x64xf32>
    %125 = vector.broadcast %7 : vector<1x64xf32> to vector<16x64xf32>
    %126 = arith.addf %124, %125 : vector<16x64xf32>
    %cst_32 = arith.constant 0.000000e+00 : f32
    %127 = vector.broadcast %cst_32 : f32 to vector<16x64xf32>
    %128 = arith.maximumf %126, %127 : vector<16x64xf32>
    %c0_33 = arith.constant 0 : index
    %c0_34 = arith.constant 0 : index
    %129 = vector.load %arg2[%c0_33, %c0_34] : memref<64x32xf32, #tpu.memory_space<vmem>>, vector<64x32xf32>
    %cst_35 = arith.constant dense<0.000000e+00> : vector<16x32xf32>
    %130 = tpu.matmul %128, %129, %cst_35 {dimension_numbers = #tpu.dot_dimension_numbers<[1], [0], [0], [1], [0, 0, 1, 1], [], []>} : vector<16x64xf32>, vector<64x32xf32>, vector<16x32xf32> -> vector<16x32xf32>
    %131 = vector.broadcast %8 : vector<1x32xf32> to vector<16x32xf32>
    %132 = arith.addf %130, %131 : vector<16x32xf32>
    %133 = arith.addf %122, %132 : vector<16x32xf32>
    %cst_36 = arith.constant dense<0.000000e+00> : vector<16xf32>
    %134 = vector.multi_reduction <add>, %133, %cst_36 [1] : vector<16x32xf32> to vector<16xf32>
    %135 = vector.shape_cast %134 : vector<16xf32> to vector<16x1xf32>
    %cst_37 = arith.constant 3.200000e+01 : f32
    %136 = vector.broadcast %cst_37 : f32 to vector<16x1xf32>
    %137 = arith.divf %135, %136 : vector<16x1xf32>
    %138 = vector.broadcast %137 : vector<16x1xf32> to vector<16x32xf32>
    %139 = arith.subf %133, %138 : vector<16x32xf32>
    %140 = arith.mulf %139, %139 : vector<16x32xf32>
    %cst_38 = arith.constant dense<0.000000e+00> : vector<16xf32>
    %141 = vector.multi_reduction <add>, %140, %cst_38 [1] : vector<16x32xf32> to vector<16xf32>
    %142 = vector.shape_cast %141 : vector<16xf32> to vector<16x1xf32>
    %cst_39 = arith.constant 3.200000e+01 : f32
    %143 = vector.broadcast %cst_39 : f32 to vector<16x1xf32>
    %144 = arith.divf %142, %143 : vector<16x1xf32>
    %145 = vector.broadcast %137 : vector<16x1xf32> to vector<16x32xf32>
    %146 = arith.subf %133, %145 : vector<16x32xf32>
    %cst_40 = arith.constant 9.99999974E-6 : f32
    %147 = vector.broadcast %cst_40 : f32 to vector<16x1xf32>
    %148 = arith.addf %144, %147 : vector<16x1xf32>
    %149 = math.rsqrt %148 : vector<16x1xf32>
    %150 = vector.broadcast %149 : vector<16x1xf32> to vector<16x32xf32>
    %151 = arith.mulf %146, %150 : vector<16x32xf32>
    %152 = vector.broadcast %9 : vector<1x32xf32> to vector<16x32xf32>
    %153 = arith.mulf %151, %152 : vector<16x32xf32>
    %154 = vector.broadcast %10 : vector<1x32xf32> to vector<16x32xf32>
    %155 = arith.addf %153, %154 : vector<16x32xf32>
    %c0_41 = arith.constant 0 : index
    %c0_42 = arith.constant 0 : index
    %156 = vector.load %arg4[%c0_41, %c0_42] : memref<16x32xf32, #tpu.memory_space<vmem>>, vector<16x32xf32>
    tpu.vector_store %arg4[%c0_41, %c0_42], %155 {strides = array<i32>} : memref<16x32xf32, #tpu.memory_space<vmem>>, vector<16x32xf32>,
    return
  }
}

</mosaic_0001>

<bundles_post_ra>
// kernel: tpu_custom_call.1
= control target key start
LH: loop header
LB: loop body
LE: loop exit
PB: predicated region body
PF: predicated region fallthrough
CT: control target
= control target key end

     0   :  { %vm33_vm0 = vcmask 261120   ;;  %s2691_s0 = inlined_call_operand.vmem [shape: f32[16,32], index: 0, kind: input, shape index: {}]   ;;  %s2692_s1 = inlined_call_operand.vmem [shape: f32[32,192], index: 1, kind: input, shape index: {}]   ;;  %s2693_s2 = inlined_call_operand.vmem [shape: f32[64,32], index: 2, kind: input, shape index: {}]   ;;  %s2694_s3 = inlined_call_operand.vmem [shape: f32[8,128], index: 3, kind: input, shape index: {}]   ;;  %s2695_s4 = inlined_call_operand.hbm [shape: f32[16,32], index: 4, kind: output, shape index: {}]  }
   0x1   :  { %v2433_v0 = vld [vmem:[%s2692_s1 + $0x30] sm:$0xff]  ;;  %v2438_v1 = vld [vmem:[%s2692_s1 + $0x20] sm:$0xff] }
   0x2   :  { %2168 = vmatprep.subr.mxu0 %v2433_v0  ;;  %v2444_v2 = vld [vmem:[%s2691_s0] sm:$0xff]  ;;  %v2450_v3 = vld [vmem:[%s2692_s1 + $0x10] sm:$0xff] }
   0x3   :  { %2169 = vmatpush3.msra.mxu0 %v2433_v0  ;;  %2176 = vmatprep.mubr.msk.f32.mxu0 %vm33_vm0, %v2444_v2 }
   0x4   :  { %9 = vsyncpa [#allocation3], 0  ;;  %2170 = vmatprep.subr.mxu0 %v2438_v1  ;;  %v2459_v4 = vld [vmem:[%s2692_s1] sm:$0xff]  ;;  %v2466_v5 = vld [vmem:[%s2691_s0 + $0x8] sm:$0xff]  ;;  %v2388_v6 = vmov 0.0   ;;  %v29_v7 = vlaneseq  ;;  %vm2389_vm1 = vmmov 0  }
   0x5   :  { %2171 = vmatpush3.msra.mxu0 %v2438_v1  ;;  %2184 = vmatprep.subr.mxu1 %v2388_v6  ;;  %v2484_v10 = vld [vmem:[%s2694_s3] sm:$0xff]  ;;  %s2390_s28 = smov 96   ;;  %vm118_vm2 = vcmask 64512   ;;  %s2391_s3 = smov 64   ;;  %vm1924_vm3 = vcmask 523264  }
   0x6   :  { %2172 = vmatprep.subr.mxu0 %v2450_v3  ;;  %v2474_v8 = vshrl.u32 %v29_v7, 7  ;;  %2186 = vmatprep.mubr.msk.f32.mxu1 %vm2389_vm1, %v2388_v6  ;;  %s2392_s29 = smov 120   ;;  %s2393_s30 = smov 88  }
   0x7   :  { %2173 = vmatpush3.msra.mxu0 %v2450_v3  ;;  %s2394_s5 = smov 56   ;;  %s2395_s6 = smov 80  }
   0x8   :  { %2174 = vmatprep.subr.mxu0 %v2459_v4  ;;  %v31_v9 = vsub.s32 0, %v2474_v8  ;;  %s2396_s7 = smov 112   ;;  %s2397_s8 = smov 32  }
   0x9   :  { %2175 = vmatpush3.msra.mxu0 %v2459_v4  ;;  %s2398_s9 = smov 48   ;;  %s2399_s10 = smov 72  }
   0xa   :  { %2177 = vmatmul.mubr.msk.f32.vlgmr.msra.gmra.mxu0 %vm33_vm0, %v2466_v5  ;;  %2179 = vmatprep.subr.mxu0 %v2388_v6  ;;  %v32_v12 = vrot.slane %v2484_v10, %v31_v9  ;;  %s2400_s11 = smov 104   ;;  %s2401_s12 = smov 40  }
   0xb   :  { %2181 = vmatprep.mubr.msk.f32.mxu0 %vm2389_vm1, %v2388_v6 }
  0xca   :  { %v2178_v11 = vpop.f32.mrf.mxu0 }
  0xcb   :  { %v2490_v15 = vadd.f32 %v2178_v11, %v32_v12 }
  0xcc   :  { %v106_v13 = vpop.f32.mrf.mxu0 }
  0xcd   :  { %v2487_v14 = vadd.f32 %v106_v13, %v32_v12 }
  0xcf   :  { %116 = vrot.lane.b32.xlu0 %v2487_v14, %s2390_s28 }
  0xd3   :  { %194 = vrot.lane.b32.xlu0 %v2490_v15, %s2390_s28 }
 0x141   :  { %v117_v16 = vpop.permute.xlu0 %116 }
 0x142   :  { %2180 = vmatpush3.xpose.msk.msra.mxu0 %vm118_vm2, %v117_v16 }
 0x143   :  { %2189 = vmatprep.subr.mxu0 %v2388_v6 }
 0x145   :  { %2182 = vmatmul.mubr.msk.f32.vlgmr.msra.gmra.mxu0 %vm118_vm2, %v2487_v14  ;;  %v195_v17 = vpop.permute.xlu0 %194 }
 0x146   :  { %2185 = vmatpush3.xpose.msk.msra.mxu1 %vm118_vm2, %v195_v17  ;;  %2191 = vmatprep.mubr.msk.f32.mxu0 %vm2389_vm1, %v2388_v6 }
 0x147   :  { %2194 = vmatprep.subr.mxu1 %v2388_v6 }
 0x149   :  { %2187 = vmatmul.mubr.msk.f32.vlgmr.msra.gmra.mxu1 %vm118_vm2, %v2490_v15 }
 0x14a   :  { %2196 = vmatprep.mubr.msk.f32.mxu1 %vm2389_vm1, %v2388_v6 }
 0x205   :  { %v189_v18 = vpop.f32.mrf.mxu0 }
 0x206   :  { %v270_v19 = vsel %vm118_vm2, %v189_v18, -inf }
 0x207   :  { %271 = vmax.xlane.f32.xlu1 %v270_v19  ;;  %v2183_v20 = vpop.f32.mrf.mxu0 }
 0x209   :  { %v266_v21 = vpop.f32.mrf.mxu1 }
 0x20a   :  { %v273_v22 = vsel %vm118_vm2, %v266_v21, -inf }
 0x20b   :  { %274 = vmax.xlane.f32.xlu1 %v273_v22  ;;  %v2188_v23 = vpop.f32.mrf.mxu1 }
 0x290   :  { %v272_v24 = vpop.xlane.xlu1 %271 }
 0x291   :  { %v276_v25 = vsub.f32 %v189_v18, %v272_v24 }
 0x293   :  { %v278_v26 = vmul.f32 1.442695, %v276_v25 }
 0x294   :  { %v275_v27 = vpop.xlane.xlu1 %274 }
 0x295   :  { %2326 = vpow2.f32 %v278_v26  ;;  %v277_v28 = vsub.f32 %v266_v21, %v275_v27 }
 0x297   :  { %v280_v29 = vmul.f32 1.442695, %v277_v28 }
 0x299   :  { %2328 = vpow2.f32 %v280_v29 }
 0x2a2   :  { %v2327_v30 = vpop.eup %2326 }
 0x2a3   :  { %v282_v31 = vsel %vm118_vm2, %v2327_v30, 0.0 }
 0x2a4   :  { %283 = vadd.xlane.f32.xlu0 %v282_v31 }
 0x2a6   :  { %v2329_v32 = vpop.eup %2328 }
 0x2a7   :  { %v285_v33 = vsel %vm118_vm2, %v2329_v32, 0.0 }
 0x2a8   :  { %286 = vadd.xlane.f32.xlu1 %v285_v33 }
 0x2b9   :  { %292 = vrot.lane.b32.xlu1 %v2487_v14, %s2391_s3 }
 0x2ba   :  { %444 = vrot.lane.b32.xlu0 %v2487_v14, %s2392_s29 }
 0x2bd   :  { %368 = vrot.lane.b32.xlu1 %v2490_v15, %s2391_s3 }
 0x2c1   :  { %446 = vrot.lane.b32.xlu1 %v2487_v14, %s2393_s30 }
 0x2c5   :  { %524 = vrot.lane.b32.xlu1 %v2490_v15, %s2393_s30 }
 0x2c9   :  { %522 = vrot.lane.b32.xlu1 %v2490_v15, %s2392_s29 }
 0x32d   :  { %v284_v34 = vpop.xlane.xlu0 %283 }
 0x32e   :  { %2330 = vrcp.f32 %v284_v34 }
 0x331   :  { %v287_v35 = vpop.xlane.xlu1 %286  ;;  %v445_v43 = vpop.permute.xlu0 %444 }
 0x332   :  { %2332 = vrcp.f32 %v287_v35 }
 0x335   :  { %v293_v36 = vpop.permute.xlu1 %292 }
 0x336   :  { %2190 = vmatpush3.msra.mxu0 %v293_v36 }
 0x337   :  { %2199 = vmatprep.subr.mxu0 %v2388_v6 }
 0x339   :  { %v369_v37 = vpop.permute.xlu1 %368 }
 0x33a   :  { %2195 = vmatpush3.msra.mxu1 %v369_v37 }
 0x33b   :  { %v2331_v38 = vpop.eup %2330  ;;  %2204 = vmatprep.subr.mxu1 %v2388_v6 }
 0x33c   :  { %v290_v39 = vmul.f32 %v2331_v38, %v2327_v30 }
 0x33d   :  { %v447_v40 = vpop.permute.xlu1 %446 }
 0x33e   :  { %2192 = vmatmul.mubr.msk.f32.vlgmr.msra.gmra.mxu0 %vm118_vm2, %v290_v39 }
 0x33f   :  { %v2333_v41 = vpop.eup %2332  ;;  %2200 = vmatpush3.xpose.msk.msra.mxu0 %vm118_vm2, %v447_v40  ;;  %2201 = vmatprep.mubr.msk.f32.mxu0 %vm2389_vm1, %v2388_v6 }
 0x340   :  { %v291_v42 = vmul.f32 %v2333_v41, %v2329_v32  ;;  %2209 = vmatprep.subr.mxu0 %v2388_v6 }
 0x341   :  { %v525_v44 = vpop.permute.xlu1 %524 }
 0x342   :  { %2197 = vmatmul.mubr.msk.f32.vlgmr.msra.gmra.mxu1 %vm118_vm2, %v291_v42  ;;  %2202 = vmatmul.mubr.msk.f32.vlgmr.msra.gmra.mxu0 %vm118_vm2, %v445_v43 }
 0x343   :  { %2205 = vmatpush3.xpose.msk.msra.mxu1 %vm118_vm2, %v525_v44  ;;  %2206 = vmatprep.mubr.msk.f32.mxu1 %vm2389_vm1, %v2388_v6 }
 0x344   :  { %2214 = vmatprep.subr.mxu1 %v2388_v6  ;;  %2211 = vmatprep.mubr.msk.f32.mxu0 %vm2389_vm1, %v2388_v6 }
 0x345   :  { %v523_v45 = vpop.permute.xlu1 %522 }
 0x346   :  { %2207 = vmatmul.mubr.msk.f32.vlgmr.msra.gmra.mxu1 %vm118_vm2, %v523_v45 }
 0x347   :  { %2216 = vmatprep.mubr.msk.f32.mxu1 %vm2389_vm1, %v2388_v6 }
 0x3fe   :  { %v364_v46 = vpop.f32.mrf.mxu0 }
 0x400   :  { %v2193_v47 = vpop.f32.mrf.mxu0 }
 0x402   :  { %v440_v48 = vpop.f32.mrf.mxu1  ;;  %v518_v49 = vpop.f32.mrf.mxu0 }
 0x403   :  { %v600_v50 = vsel %vm118_vm2, %v518_v49, -inf }
 0x404   :  { %v2198_v51 = vpop.f32.mrf.mxu1  ;;  %601 = vmax.xlane.f32.xlu1 %v600_v50  ;;  %v2203_v52 = vpop.f32.mrf.mxu0 }
 0x406   :  { %v596_v53 = vpop.f32.mrf.mxu1 }
 0x407   :  { %v603_v54 = vsel %vm118_vm2, %v596_v53, -inf }
 0x408   :  { %604 = vmax.xlane.f32.xlu0 %v603_v54  ;;  %v2208_v55 = vpop.f32.mrf.mxu1 }
 0x41e   :  { %698 = vrot.lane.b32.xlu0 %v2490_v15, %s2394_s5 }
 0x422   :  { %946 = vrot.lane.b32.xlu0 %v2487_v14, %s2395_s6 }
 0x426   :  { %944 = vrot.lane.b32.xlu0 %v2487_v14, %s2396_s7 }
 0x48d   :  { %v602_v56 = vpop.xlane.xlu1 %601 }
 0x48e   :  { %v606_v57 = vsub.f32 %v518_v49, %v602_v56 }
 0x490   :  { %v608_v60 = vmul.f32 1.442695, %v606_v57 }
 0x491   :  { %v605_v58 = vpop.xlane.xlu0 %604 }
 0x492   :  { %v607_v59 = vsub.f32 %v596_v53, %v605_v58 }
 0x494   :  { %v610_v61 = vmul.f32 1.442695, %v607_v59 }
 0x495   :  { %v699_v62 = vpop.permute.xlu0 %698 }
 0x496   :  { %2334 = vpow2.f32 %v610_v61  ;;  %2215 = vmatpush3.msra.mxu1 %v699_v62 }
 0x497   :  { %2336 = vpow2.f32 %v608_v60 }
 0x499   :  { %v947_v25 = vpop.permute.xlu0 %946 }
 0x49d   :  { %v945_v31 = vpop.permute.xlu0 %944 }
 0x4a3   :  { %v2335_v63 = vpop.eup %2334 }
 0x4a4   :  { %v615_v7 = vsel %vm118_vm2, %v2335_v63, 0.0  ;;  %v2337_v9 = vpop.eup %2336 }
 0x4a5   :  { %616 = vadd.xlane.f32.xlu1 %v615_v7  ;;  %v612_v11 = vsel %vm118_vm2, %v2337_v9, 0.0 }
 0x4a9   :  { %613 = vadd.xlane.f32.xlu1 %v612_v11 }
 0x4ba   :  { %622 = vrot.lane.b32.xlu1 %v2487_v14, %s2394_s5 }
 0x4be   :  { %775 = vrot.lane.b32.xlu1 %v2450_v3, %s2397_s8 }
 0x4c2   :  { %860 = vrot.lane.b32.xlu1 %v2459_v4, %s2397_s8 }
 0x4c6   :  { %1024 = vrot.lane.b32.xlu1 %v2490_v15, %s2395_s6 }
 0x4ca   :  { %1022 = vrot.lane.b32.xlu1 %v2490_v15, %s2396_s7 }
 0x52e   :  { %v617_v12 = vpop.xlane.xlu1 %616 }
 0x52f   :  { %2338 = vrcp.f32 %v617_v12 }
 0x532   :  { %v614_v13 = vpop.xlane.xlu1 %613 }
 0x533   :  { %2340 = vrcp.f32 %v614_v13 }
 0x536   :  { %v623_v16 = vpop.permute.xlu1 %622 }
 0x537   :  { %2210 = vmatpush3.msra.mxu0 %v623_v16 }
 0x53a   :  { %v776_v17 = vpop.permute.xlu1 %775 }
 0x53b   :  { %2219 = vmatprep.subr.mxu0 %v776_v17 }
 0x53c   :  { %v2339_v18 = vpop.eup %2338 }
 0x53d   :  { %v621_v19 = vmul.f32 %v2339_v18, %v2335_v63 }
 0x53e   :  { %v861_v20 = vpop.permute.xlu1 %860 }
 0x53f   :  { %2217 = vmatmul.mubr.msk.f32.vlgmr.msra.gmra.mxu1 %vm118_vm2, %v621_v19  ;;  %2224 = vmatprep.subr.mxu1 %v861_v20 }
 0x540   :  { %v2341_v3 = vpop.eup %2340  ;;  %2226 = vmatprep.mubr.msk.f32.mxu1 %vm118_vm2, %v364_v46  ;;  %2225 = vmatpush3.msra.mxu1 %v861_v20 }
 0x541   :  { %2234 = vmatprep.subr.mxu1 %v2388_v6  ;;  %v620_v4 = vmul.f32 %v2341_v3, %v2337_v9 }
 0x542   :  { %v1025_v21 = vpop.permute.xlu1 %1024 }
 0x543   :  { %2212 = vmatmul.mubr.msk.f32.vlgmr.msra.gmra.mxu0 %vm118_vm2, %v620_v4  ;;  %2227 = vmatmul.mubr.msk.f32.vlgmr.msra.gmra.mxu1 %vm118_vm2, %v440_v48 }
 0x544   :  { %2235 = vmatpush3.xpose.msk.msra.mxu1 %vm118_vm2, %v1025_v21  ;;  %2236 = vmatprep.mubr.msk.f32.mxu1 %vm2389_vm1, %v2388_v6 }
 0x545   :  { %2220 = vmatpush3.msra.mxu0 %v776_v17  ;;  %2244 = vmatprep.subr.mxu1 %v2388_v6 }
 0x546   :  { %v1023_v22 = vpop.permute.xlu1 %1022  ;;  %2229 = vmatprep.subr.mxu0 %v2388_v6 }
 0x547   :  { %2237 = vmatmul.mubr.msk.f32.vlgmr.msra.gmra.mxu1 %vm118_vm2, %v1023_v22 }
 0x548   :  { %2246 = vmatprep.mubr.msk.f32.mxu1 %vm2389_vm1, %v2388_v6 }
 0x5ff   :  { %v770_v23 = vpop.f32.mrf.mxu1 }
 0x601   :  { %v2218_v24 = vpop.f32.mrf.mxu1 }
 0x603   :  { %v694_v26 = vpop.f32.mrf.mxu0  ;;  %v2560_v27 = vpop.f32.mrf.mxu1 }
 0x604   :  { %2221 = vmatprep.mubr.msk.f32.mxu0 %vm118_vm2, %v694_v26 }
 0x605   :  { %v2213_v28 = vpop.f32.mrf.mxu0  ;;  %2222 = vmatmul.mubr.msk.f32.vlgmr.msra.gmra.mxu0 %vm118_vm2, %v770_v23  ;;  %v2564_v29 = vpop.f32.mrf.mxu1 }
 0x606   :  { %2230 = vmatpush3.xpose.msk.msra.mxu0 %vm118_vm2, %v947_v25  ;;  %2231 = vmatprep.mubr.msk.f32.mxu0 %vm2389_vm1, %v2388_v6 }
 0x607   :  { %v1096_v30 = vpop.f32.mrf.mxu1  ;;  %2239 = vmatprep.subr.mxu0 %v2388_v6 }
 0x608   :  { %v1103_v32 = vsel %vm118_vm2, %v1096_v30, -inf }
 0x609   :  { %1104 = vmax.xlane.f32.xlu1 %v1103_v32  ;;  %2232 = vmatmul.mubr.msk.f32.vlgmr.msra.gmra.mxu0 %vm118_vm2, %v945_v31  ;;  %v2238_v33 = vpop.f32.mrf.mxu1 }
 0x60a   :  { %2241 = vmatprep.mubr.msk.f32.mxu0 %vm2389_vm1, %v2388_v6 }
 0x61a   :  { %1122 = vrot.lane.b32.xlu1 %v2487_v14, %s2398_s9 }
 0x61e   :  { %1275 = vrot.lane.b32.xlu1 %v2438_v1, %s2397_s8 }
 0x622   :  { %1363 = vrot.lane.b32.xlu1 %v2487_v14, %s2399_s10 }
 0x626   :  { %1361 = vrot.lane.b32.xlu1 %v2487_v14, %s2400_s11 }
 0x692   :  { %v1105_v34 = vpop.xlane.xlu1 %1104 }
 0x693   :  { %v1107_v37 = vsub.f32 %v1096_v30, %v1105_v34 }
 0x695   :  { %v1110_v38 = vmul.f32 1.442695, %v1107_v37 }
 0x696   :  { %v1123_v35 = vpop.permute.xlu1 %1122 }
 0x697   :  { %2240 = vmatpush3.msra.mxu0 %v1123_v35  ;;  %2342 = vpow2.f32 %v1110_v38 }
 0x69a   :  { %v1276_v36 = vpop.permute.xlu1 %1275 }
 0x69b   :  { %2249 = vmatprep.subr.mxu0 %v1276_v36 }
 0x69e   :  { %v1364_v53 = vpop.permute.xlu1 %1363 }
 0x6a2   :  { %v1362_v56 = vpop.permute.xlu1 %1361 }
 0x6a4   :  { %v2343_v42 = vpop.eup %2342 }
 0x6a5   :  { %v1115_v44 = vsel %vm118_vm2, %v2343_v42, 0.0 }
 0x6c5   :  { %v2223_v39 = vpop.f32.mrf.mxu0 }
 0x6c6   :  { %v941_v18 = vadd.f32 %v2560_v27, %v2223_v39 }
 0x6c7   :  { %v2580_v40 = vpop.f32.mrf.mxu0 }
 0x6c8   :  { %v936_v20 = vadd.f32 %v2564_v29, %v2580_v40 }
 0x6c9   :  { %v1018_v41 = vpop.f32.mrf.mxu0 }
 0x6ca   :  { %v1100_v1 = vsel %vm118_vm2, %v1018_v41, -inf }
 0x6cb   :  { %1101 = vmax.xlane.f32.xlu0 %v1100_v1  ;;  %v2233_v43 = vpop.f32.mrf.mxu0 }
 0x6cf   :  { %1116 = vadd.xlane.f32.xlu0 %v1115_v44 }
 0x754   :  { %v1102_v45 = vpop.xlane.xlu0 %1101 }
 0x755   :  { %v1106_v46 = vsub.f32 %v1018_v41, %v1102_v45 }
 0x757   :  { %v1108_v47 = vmul.f32 1.442695, %v1106_v46 }
 0x758   :  { %v1117_v50 = vpop.xlane.xlu0 %1116 }
 0x759   :  { %2344 = vpow2.f32 %v1108_v47 }
 0x75a   :  { %2346 = vrcp.f32 %v1117_v50 }
 0x766   :  { %v2345_v48 = vpop.eup %2344 }
 0x767   :  { %v1112_v49 = vsel %vm118_vm2, %v2345_v48, 0.0  ;;  %v2347_v52 = vpop.eup %2346 }
 0x768   :  { %1113 = vadd.xlane.f32.xlu0 %v1112_v49  ;;  %v1121_v55 = vmul.f32 %v2347_v52, %v2343_v42 }
 0x77e   :  { %1198 = vrot.lane.b32.xlu0 %v2490_v15, %s2398_s9 }
 0x782   :  { %1441 = vrot.lane.b32.xlu0 %v2490_v15, %s2399_s10 }
 0x786   :  { %1439 = vrot.lane.b32.xlu0 %v2490_v15, %s2400_s11 }
 0x7f1   :  { %v1114_v51 = vpop.xlane.xlu0 %1113 }
 0x7f2   :  { %2348 = vrcp.f32 %v1114_v51 }
 0x7f5   :  { %v1199_v54 = vpop.permute.xlu0 %1198 }
 0x7f6   :  { %2245 = vmatpush3.msra.mxu1 %v1199_v54 }
 0x7f7   :  { %2247 = vmatmul.mubr.msk.f32.vlgmr.msra.gmra.mxu1 %vm118_vm2, %v1121_v55  ;;  %2254 = vmatprep.subr.mxu1 %v2388_v6 }
 0x7f8   :  { %2255 = vmatpush3.xpose.msk.msra.mxu1 %vm118_vm2, %v1364_v53  ;;  %2256 = vmatprep.mubr.msk.f32.mxu1 %vm2389_vm1, %v2388_v6 }
 0x7f9   :  { %2264 = vmatprep.subr.mxu1 %v2388_v6  ;;  %v1442_v7 = vpop.permute.xlu0 %1441 }
 0x7fb   :  { %2257 = vmatmul.mubr.msk.f32.vlgmr.msra.gmra.mxu1 %vm118_vm2, %v1362_v56 }
 0x7fc   :  { %2266 = vmatprep.mubr.msk.f32.mxu1 %vm2389_vm1, %v2388_v6 }
 0x7fd   :  { %v1440_v12 = vpop.permute.xlu0 %1439 }
 0x7ff   :  { %v2349_v57 = vpop.eup %2348 }
 0x800   :  { %v1120_v58 = vmul.f32 %v2349_v57, %v2345_v48 }
 0x802   :  { %2242 = vmatmul.mubr.msk.f32.vlgmr.msra.gmra.mxu0 %vm118_vm2, %v1120_v58 }
 0x803   :  { %2250 = vmatpush3.msra.mxu0 %v1276_v36 }
 0x804   :  { %2259 = vmatprep.subr.mxu0 %v2388_v6 }
 0x8b7   :  { %v1270_v59 = vpop.f32.mrf.mxu1 }
 0x8b9   :  { %v2248_v60 = vpop.f32.mrf.mxu1 }
 0x8ba   :  { %v27_v60 = vld [vmem:[%s2692_s1 + $0x38] sm:$0xff] }
 0x8bb   :  { %v1435_v61 = vpop.f32.mrf.mxu1 }
 0x8bc   :  { %v1517_v62 = vsel %vm118_vm2, %v1435_v61, -inf }
 0x8bd   :  { %1518 = vmax.xlane.f32.xlu1 %v1517_v62  ;;  %v2258_v63 = vpop.f32.mrf.mxu1  ;;  %v23_v62 = vld [vmem:[%s2692_s1 + $0x18] sm:$0xff] }
 0x8be   :  { %v21_v63 = vld [vmem:[%s2692_s1 + $0x8] sm:$0xff] }
 0x8c2   :  { %v1194_v9 = vpop.f32.mrf.mxu0 }
 0x8c3   :  { %2251 = vmatprep.mubr.msk.f32.mxu0 %vm118_vm2, %v1194_v9  ;;  %v1918_v9 = vld [vmem:[%s2693_s2 + $0x30] sm:$0xff] }
 0x8c4   :  { %v2243_v11 = vpop.f32.mrf.mxu0  ;;  %2252 = vmatmul.mubr.msk.f32.vlgmr.msra.gmra.mxu0 %vm118_vm2, %v1270_v59 }
 0x8c5   :  { %2260 = vmatpush3.xpose.msk.msra.mxu0 %vm118_vm2, %v1442_v7  ;;  %2261 = vmatprep.mubr.msk.f32.mxu0 %vm2389_vm1, %v2388_v6  ;;  %v1919_v7 = vld [vmem:[%s2693_s2 + $0x38] sm:$0xff]  ;;  %v1917_v11 = vld [vmem:[%s2693_s2 + $0x28] sm:$0xff] }
 0x8c6   :  { %2269 = vmatprep.subr.mxu0 %v2388_v6 }
 0x8c8   :  { %2262 = vmatmul.mubr.msk.f32.vlgmr.msra.gmra.mxu0 %vm118_vm2, %v1440_v12  ;;  %v1916_v12 = vld [vmem:[%s2693_s2 + $0x20] sm:$0xff] }
 0x8c9   :  { %2271 = vmatprep.mubr.msk.f32.mxu0 %vm2389_vm1, %v2388_v6 }
 0x946   :  { %v1519_v13 = vpop.xlane.xlu1 %1518 }
 0x947   :  { %v1523_v16 = vsub.f32 %v1435_v61, %v1519_v13  ;;  %v25_v61 = vld [vmem:[%s2692_s1 + $0x28] sm:$0xff] }
 0x949   :  { %v1525_v17 = vmul.f32 1.442695, %v1523_v16 }
 0x94b   :  { %2350 = vpow2.f32 %v1525_v17 }
 0x958   :  { %v2351_v24 = vpop.eup %2350 }
 0x959   :  { %v1529_v6 = vsel %vm118_vm2, %v2351_v24, 0.0 }
 0x984   :  { %v2253_v19 = vpop.f32.mrf.mxu0 }
 0x985   :  { %v1360_v3 = vadd.f32 %v2253_v19, %v941_v18 }
 0x986   :  { %v1350_v4 = vpop.f32.mrf.mxu0 }
 0x987   :  { %v1359_v21 = vadd.f32 %v1350_v4, %v936_v20  ;;  %v1821_v4 = vsub.s32 3, %v2474_v8 }
 0x988   :  { %v1513_v22 = vpop.f32.mrf.mxu0 }
 0x989   :  { %v1520_v23 = vsel %vm118_vm2, %v1513_v22, -inf }
 0x98a   :  { %1521 = vmax.xlane.f32.xlu0 %v1520_v23  ;;  %v2263_v25 = vpop.f32.mrf.mxu0 }
 0x98e   :  { %1530 = vadd.xlane.f32.xlu0 %v1529_v6 }
 0x9a4   :  { %1539 = vrot.lane.b32.xlu0 %v2487_v14, %s2401_s12 }
 0xa13   :  { %v1522_v26 = vpop.xlane.xlu0 %1521 }
 0xa14   :  { %v1524_v27 = vsub.f32 %v1513_v22, %v1522_v26 }
 0xa16   :  { %v1527_v28 = vmul.f32 1.442695, %v1524_v27 }
 0xa17   :  { %v1531_v30 = vpop.xlane.xlu0 %1530 }
 0xa18   :  { %2352 = vpow2.f32 %v1527_v28 }
 0xa19   :  { %2354 = vrcp.f32 %v1531_v30 }
 0xa1b   :  { %v1540_v29 = vpop.permute.xlu0 %1539 }
 0xa1c   :  { %2265 = vmatpush3.msra.mxu1 %v1540_v29  ;;  %v1915_v29 = vld [vmem:[%s2693_s2 + $0x18] sm:$0xff] }
 0xa25   :  { %v2353_v31 = vpop.eup %2352 }
 0xa26   :  { %v2355_v32 = vpop.eup %2354  ;;  %v1532_v33 = vsel %vm118_vm2, %v2353_v31, 0.0 }
 0xa27   :  { %1533 = vadd.xlane.f32.xlu1 %v1532_v33  ;;  %v1537_v34 = vmul.f32 %v2355_v32, %v2351_v24  ;;  %v1822_v24 = vrot.slane %v2484_v10, %v1821_v4  ;;  %v1913_v32 = vld [vmem:[%s2693_s2 + $0x8] sm:$0xff]  ;;  %v1912_v33 = vld [vmem:[%s2693_s2] sm:$0xff] }
 0xa29   :  { %2267 = vmatmul.mubr.msk.f32.vlgmr.msra.gmra.mxu1 %vm118_vm2, %v1537_v34  ;;  %v1827_v34 = vsub.s32 4, %v2474_v8 }
 0xa38   :  { %1615 = vrot.lane.b32.xlu1 %v2490_v15, %s2401_s12 }
 0xa3c   :  { %1692 = vrot.lane.b32.xlu1 %v2433_v0, %s2397_s8  ;;  %v1782_v0 = vsub.s32 1, %v2474_v8 }
 0xa3e   :  { %v1783_v43 = vrot.slane %v2484_v10, %v1782_v0 }
 0xab0   :  { %v1534_v14 = vpop.xlane.xlu1 %1533 }
 0xab1   :  { %2356 = vrcp.f32 %v1534_v14  ;;  %v1828_v14 = vrot.slane %v2484_v10, %v1827_v34 }
 0xab4   :  { %v1616_v35 = vpop.permute.xlu1 %1615 }
 0xab5   :  { %2270 = vmatpush3.msra.mxu0 %v1616_v35 }
 0xab6   :  { %2279 = vmatprep.subr.mxu0 %v27_v60 }
 0xab8   :  { %v1693_v36 = vpop.permute.xlu1 %1692 }
 0xab9   :  { %2274 = vmatprep.subr.mxu1 %v1693_v36 }
 0xaba   :  { %2275 = vmatpush3.msra.mxu1 %v1693_v36 }
 0xabb   :  { %2290 = vmatprep.subr.mxu1 %v1919_v7 }
 0xabe   :  { %v2357_v37 = vpop.eup %2356 }
 0xabf   :  { %v1538_v38 = vmul.f32 %v2357_v37, %v2353_v31  ;;  %v1914_v31 = vld [vmem:[%s2693_s2 + $0x10] sm:$0xff]  ;;  %s2402_s2 = smov [#allocation2]  }
 0xac0   :  { %s2053_s8 = sshll.u32 %s2402_s2, 4  ;;  %s2054_s8 = int_to_ptr.vmem [resolvable:$true] %s2053_s8 }
 0xac1   :  { %2272 = vmatmul.mubr.msk.f32.vlgmr.msra.gmra.mxu0 %vm118_vm2, %v1538_v38  ;;  %s2366_s9 = scalar_lea.vmem %s2054_s8, 256  ;;  %p2371_p1 = scmp.lt.s32.totalorder %s2054_s8, %s2054_s8 }
 0xac2   :  { %2280 = vmatpush3.msra.mxu0 %v27_v60  ;;  %p2367_p0 = scmp.ne.s32.totalorder %s2054_s8, %s2366_s9  ;;  %p2372_p2 = scmp.lt.s32.totalorder %s2366_s9, %s2366_s9 }
 0xac3   :  { %2281 = vmatprep.subr.mxu0 %v25_v61 }
 0xac4   :  { %2282 = vmatpush3.msra.mxu0 %v25_v61  ;;  %p2373_p3 = por %p2372_p2, %p2371_p1 }
 0xac5   :  { %2283 = vmatprep.subr.mxu0 %v23_v62 }
 0xac6   :  { %2284 = vmatpush3.msra.mxu0 %v23_v62  ;;  %v2036_v62 = vsub.s32 6, %v2474_v8  ;;  %p2374_p4 = pnand %p2373_p3, %p2367_p0 }
 0xac7   :  { %2285 = vmatprep.subr.mxu0 %v21_v63 }
 0xac8   :  { %2286 = vmatpush3.msra.mxu0 %v21_v63  ;;  %v2042_v63 = vsub.s32 7, %v2474_v8 }
 0xae9   :  { %v1611_v39 = vpop.f32.mrf.mxu1 }
 0xaea   :  { %2276 = vmatprep.mubr.msk.f32.mxu1 %vm118_vm2, %v1611_v39 }
 0xaeb   :  { %v2268_v40 = vpop.f32.mrf.mxu1 }
 0xb81   :  { %v1687_v41 = vpop.f32.mrf.mxu0 }
 0xb82   :  { %2277 = vmatmul.mubr.msk.f32.vlgmr.msra.gmra.mxu1 %vm118_vm2, %v1687_v41  ;;  %v1922_v41 = vsub.s32 5, %v2474_v8 }
 0xb83   :  { %v2273_v15 = vpop.f32.mrf.mxu0  ;;  %2291 = vmatpush3.msra.mxu1 %v1919_v7  ;;  %v2037_v7 = vrot.slane %v2484_v10, %v2036_v62 }
 0xb84   :  { %2292 = vmatprep.subr.mxu1 %v1918_v9  ;;  %v1923_v15 = vrot.slane %v2484_v10, %v1922_v41 }
 0xb85   :  { %2293 = vmatpush3.msra.mxu1 %v1918_v9 }
 0xb86   :  { %2294 = vmatprep.subr.mxu1 %v1917_v11 }
 0xb87   :  { %2295 = vmatpush3.msra.mxu1 %v1917_v11 }
 0xb88   :  { %2296 = vmatprep.subr.mxu1 %v1916_v12 }
 0xb89   :  { %2297 = vmatpush3.msra.mxu1 %v1916_v12  ;;  %v2043_v12 = vrot.slane %v2484_v10, %v2042_v63 }
 0xb8a   :  { %2298 = vmatprep.subr.mxu1 %v1915_v29 }
 0xb8b   :  { %2299 = vmatpush3.msra.mxu1 %v1915_v29 }
 0xb8c   :  { %2300 = vmatprep.subr.mxu1 %v1914_v31 }
 0xb8d   :  { %2301 = vmatpush3.msra.mxu1 %v1914_v31 }
 0xb8e   :  { %2302 = vmatprep.subr.mxu1 %v1913_v32 }
 0xb8f   :  { %2303 = vmatpush3.msra.mxu1 %v1913_v32 }
 0xb90   :  { %2304 = vmatprep.subr.mxu1 %v1912_v33 }
 0xb91   :  { %2305 = vmatpush3.msra.mxu1 %v1912_v33 }
 0xc42   :  { %v2278_v1 = vpop.f32.mrf.mxu1 }
 0xc43   :  { %v1777_v42 = vadd.f32 %v2278_v1, %v1360_v3  ;;  %v1815_v3 = vsub.s32 2, %v2474_v8 }
 0xc44   :  { %v1767_v44 = vpop.f32.mrf.mxu1 }
 0xc45   :  { %v1779_v45 = vadd.f32 %v1777_v42, %v2466_v5  ;;  %v1776_v46 = vadd.f32 %v1767_v44, %v1359_v21  ;;  %v1816_v21 = vrot.slane %v2484_v10, %v1815_v3 }
 0xc47   :  { %v1778_v47 = vadd.f32 %v1776_v46, %v2444_v2  ;;  %v1785_v48 = vadd.f32 %v1783_v43, %v1779_v45 }
 0xc49   :  { %v1789_v49 = vsel %vm33_vm0, %v1785_v48, 0.0  ;;  %v1784_v50 = vadd.f32 %v1783_v43, %v1778_v47 }
 0xc4a   :  { %1790 = vadd.xlane.f32.xlu1 %v1789_v49 }
 0xc4b   :  { %v1786_v51 = vsel %vm33_vm0, %v1784_v50, 0.0 }
 0xc4c   :  { %1787 = vadd.xlane.f32.xlu0 %v1786_v51 }
 0xcd3   :  { %v1791_v52 = vpop.xlane.xlu1 %1790 }
 0xcd4   :  { %v1794_v53 = vmul.f32 0.03125, %v1791_v52 }
 0xcd5   :  { %v1788_v54 = vpop.xlane.xlu0 %1787 }
 0xcd6   :  { %v1793_v55 = vmul.f32 0.03125, %v1788_v54  ;;  %v1796_v56 = vsub.f32 %v1785_v48, %v1794_v53 }
 0xcd8   :  { %v1795_v57 = vsub.f32 %v1784_v50, %v1793_v55  ;;  %v1798_v59 = vmul.f32 %v1796_v56, %v1796_v56 }
 0xcda   :  { %v1797_v58 = vmul.f32 %v1795_v57, %v1795_v57  ;;  %v1802_v2 = vsel %vm33_vm0, %v1798_v59, 0.0 }
 0xcdc   :  { %v1799_v5 = vsel %vm33_vm0, %v1797_v58, 0.0 }
 0xcdd   :  { %1800 = vadd.xlane.f32.xlu0 %v1799_v5 }
 0xce1   :  { %1803 = vadd.xlane.f32.xlu0 %v1802_v2 }
 0xd66   :  { %v1801_v13 = vpop.xlane.xlu0 %1800 }
 0xd67   :  { %v1805_v16 = vmul.f32 0.03125, %v1801_v13 }
 0xd69   :  { %v1807_v17 = vadd.f32 1e-05, %v1805_v16 }
 0xd6a   :  { %v1804_v18 = vpop.xlane.xlu0 %1803 }
 0xd6b   :  { %2358 = vrsqrt.f32 %v1807_v17  ;;  %v1806_v19 = vmul.f32 0.03125, %v1804_v18 }
 0xd6d   :  { %v1808_v20 = vadd.f32 1e-05, %v1806_v19 }
 0xd6f   :  { %2360 = vrsqrt.f32 %v1808_v20 }
 0xd78   :  { %v2359_v22 = vpop.eup %2358 }
 0xd79   :  { %v1811_v23 = vmul.f32 %v2359_v22, %v1795_v57 }
 0xd7b   :  { %v1817_v25 = vmul.f32 %v1816_v21, %v1811_v23 }
 0xd7c   :  { %v2361_v6 = vpop.eup %2360 }
 0xd7d   :  { %v1812_v26 = vmul.f32 %v2361_v6, %v1796_v56  ;;  %v1823_v27 = vadd.f32 %v1822_v24, %v1817_v25 }
 0xd7f   :  { %v1818_v28 = vmul.f32 %v1816_v21, %v1812_v26  ;;  %2287 = vmatprep.mubr.msk.f32.mxu0 %vm33_vm0, %v1823_v27 }
 0xd81   :  { %v1824_v30 = vadd.f32 %v1822_v24, %v1818_v28 }
 0xd83   :  { %2288 = vmatmul.mubr.msk.f32.vlgmr.msra.gmra.mxu0 %vm33_vm0, %v1824_v30 }
 0xe43   :  { %v2289_v35 = vpop.f32.mrf.mxu0 }
 0xe44   :  { %v1907_v36 = vadd.f32 %v2289_v35, %v1828_v14 }
 0xe45   :  { %v1901_v37 = vpop.f32.mrf.mxu0 }
 0xe46   :  { %v1902_v38 = vadd.f32 %v1901_v37, %v1828_v14  ;;  %v1911_v40 = vmax.f32 %v1907_v36, 0.0 }
 0xe48   :  { %v1910_v39 = vmax.f32 %v1902_v38, 0.0 }
 0xe4a   :  { %2306 = vmatprep.mubr.msk.f32.mxu1 %vm1924_vm3, %v1910_v39 }
 0xe4b   :  { %2307 = vmatmul.mubr.msk.f32.vlgmr.msra.gmra.mxu1 %vm1924_vm3, %v1911_v40 }
 0xf0b   :  { %v2308_v0 = vpop.f32.mrf.mxu1 }
 0xf0c   :  { %v2003_v1 = vadd.f32 %v2308_v0, %v1923_v15 }
 0xf0d   :  { %v1997_v42 = vpop.f32.mrf.mxu1 }
 0xf0e   :  { %v1998_v43 = vadd.f32 %v1997_v42, %v1923_v15  ;;  %v2007_v44 = vadd.f32 %v2003_v1, %v1824_v30 }
 0xf10   :  { %v2011_v45 = vsel %vm33_vm0, %v2007_v44, 0.0  ;;  %v2006_v46 = vadd.f32 %v1998_v43, %v1823_v27 }
 0xf11   :  { %2012 = vadd.xlane.f32.xlu0 %v2011_v45 }
 0xf12   :  { %v2008_v47 = vsel %vm33_vm0, %v2006_v46, 0.0 }
 0xf13   :  { %2009 = vadd.xlane.f32.xlu1 %v2008_v47 }
 0xf9a   :  { %v2013_v48 = vpop.xlane.xlu0 %2012 }
 0xf9b   :  { %v2015_v49 = vmul.f32 0.03125, %v2013_v48 }
 0xf9c   :  { %v2010_v50 = vpop.xlane.xlu1 %2009 }
 0xf9d   :  { %v2017_v51 = vsub.f32 %v2007_v44, %v2015_v49  ;;  %v2014_v52 = vmul.f32 0.03125, %v2010_v50 }
 0xf9f   :  { %v2016_v53 = vsub.f32 %v2006_v46, %v2014_v52  ;;  %v2019_v54 = vmul.f32 %v2017_v51, %v2017_v51 }
 0xfa1   :  { %v2023_v55 = vsel %vm33_vm0, %v2019_v54, 0.0  ;;  %v2018_v56 = vmul.f32 %v2016_v53, %v2016_v53 }
 0xfa2   :  { %2024 = vadd.xlane.f32.xlu0 %v2023_v55 }
 0xfa3   :  { %v2020_v57 = vsel %vm33_vm0, %v2018_v56, 0.0 }
 0xfa4   :  { %2021 = vadd.xlane.f32.xlu1 %v2020_v57 }
0x102b   :  { %v2025_v58 = vpop.xlane.xlu0 %2024 }
0x102c   :  { %v2027_v5 = vmul.f32 0.03125, %v2025_v58 }
0x102d   :  { %v2022_v59 = vpop.xlane.xlu1 %2021 }
0x102e   :  { %v2029_v2 = vadd.f32 1e-05, %v2027_v5  ;;  %v2026_v60 = vmul.f32 0.03125, %v2022_v59 }
0x1030   :  { %2362 = vrsqrt.f32 %v2029_v2  ;;  %v2028_v61 = vadd.f32 1e-05, %v2026_v60 }
0x1032   :  { %2364 = vrsqrt.f32 %v2028_v61 }
0x103d   :  { %v2363_v9 = vpop.eup %2362 }
0x103e   :  { %v2033_v11 = vmul.f32 %v2363_v9, %v2017_v51 }
0x103f   :  { %v2365_v13 = vpop.eup %2364 }
0x1040   :  { %v2032_v16 = vmul.f32 %v2365_v13, %v2016_v53  ;;  %v2039_v17 = vmul.f32 %v2037_v7, %v2033_v11 }
0x1042   :  { %v2038_v18 = vmul.f32 %v2037_v7, %v2032_v16  ;;  %v2045_v19 = vadd.f32 %v2043_v12, %v2039_v17 }
0x1044   :  { %v2044_v20 = vadd.f32 %v2043_v12, %v2038_v18  ;;  %2047 = vst.msk [vmem:[#allocation2 + $0x8] sm:$0xff] %vm33_vm0, %v2045_v19 }
0x1046   :  { %2046 = vst.msk [vmem:[#allocation2] sm:$0xff] %vm33_vm0, %v2044_v20 }
0x1047   :  { %2377 = shalt.err (!%p2374_p4)
}
0x1048   :  { %s2403_s10 = smov 128   ;;  %s2404_s11 = smov 8  }
0x1049   :  { %2059 = dma.vmem_to_hbm [thread:$0]  %s2054_s8, 256, %s2695_s4, [#allocation3], %s2403_s10, %s2403_s10, %s2404_s11  }
0x104a   :  { %2386 = dma.done.wait [#allocation3], 256  }
0x104b   :  { %2387 = vsyncadd [#allocation3], 4294967040 }
0x104c   :  { %2063 = vsyncpa [#allocation3], 1 }

</bundles_post_ra>
